<compile_context>
chip_gen: v7x
topology: tpu7x:2x2x1
jax: 0.10.0
libtpu: 0.0.40
codegen_flags: <defaults>
</compile_context>

<pallas_src>
import math
import functools

import numpy as np
import jax
import jax.numpy as jnp
from jax import lax
from jax.experimental import pallas as pl
from jax.experimental.pallas import tpu as pltpu


def attn_kernel(q_ref, k_ref, v_ref, wo_ref, o_ref, ctx_ref,
                *, head_dim, q_block, k_block, mxu_dtype):
    """One (batch, q-tile, k-tile) grid step of causal MHA with head-axis softmax."""
    ki = pl.program_id(2)

    @pl.when(ki == 0)
    def _():
        ctx_ref[...] = jnp.zeros_like(ctx_ref)

    scale = 1.0 / math.sqrt(float(head_dim))   # == / torch.sqrt(torch.tensor(head_dim))
    qh = (q_ref[...] * scale).astype(mxu_dtype)          # (H, tq, d)
    kh = k_ref[...].astype(mxu_dtype)                    # (H, tk, d)

    # Scores for this (q-tile, k-tile).  Heads are the leading (batch) dim of
    # one batched MXU einsum, so the head-axis softmax below is a cheap
    # cross-vreg VPU reduce.
    s = jnp.einsum('hqd,hkd->hqk', qh, kh,
                   preferred_element_type=jnp.float32)   # (H, tq, tk)

    # Causal mask built in-kernel: triu(ones, diagonal=1) == (key > query).
    q_start = pl.program_id(1) * q_block
    k_start = ki * k_block
    rows = lax.broadcasted_iota(jnp.int32, (q_block, k_block), 0) + q_start
    cols = lax.broadcasted_iota(jnp.int32, (q_block, k_block), 1) + k_start
    s = jnp.where((cols > rows)[None, :, :], -jnp.inf, s)

    # Softmax over the HEAD axis (dim=1 of the (B,H,T,T) scores in PyTorch).
    # It is purely local per (q, k), so key tiling needs no online-softmax.
    m = jnp.max(s, axis=0, keepdims=True)
    e = jnp.exp(s - m)
    l = jnp.sum(e, axis=0, keepdims=True)                # (1, tq, tk)
    w = e * pl.reciprocal(l, approx=True)                # EUP reciprocal

    # dropout p=0.0 -> identity.
    # TODO(synk): training-mode dropout (p > 0) not implemented in-kernel.

    ctx_ref[...] += jnp.einsum('hqk,hkd->hqd', w.astype(mxu_dtype),
                               v_ref[...].astype(mxu_dtype),
                               preferred_element_type=jnp.float32)   # (H, tq, d)

    @pl.when(ki == pl.num_programs(2) - 1)
    def _():
        # Fused output projection: out = sum_h ctx_h @ wo[h*d:(h+1)*d, :]
        # (output stays lane-dense (tq, out_dim); no HBM round-trip for ctx).
        # TODO(synk): a single (tq, H*d) @ (H*d, out_dim) matmul would fill the
        # MXU K dim better, but the in-kernel (H,tq,d)->(tq,H*d) relayout does
        # not lower robustly for head_dim < 128, so the per-head contraction +
        # head-sum form is kept.
        out = jnp.einsum('hqd,hdo->hqo', ctx_ref[...].astype(mxu_dtype),
                         wo_ref[...].astype(mxu_dtype),
                         preferred_element_type=jnp.float32).sum(axis=0)
        o_ref[...] = out.astype(o_ref.dtype)


def _pick_tile(T, requested, preferred):
    if requested is not None and T % requested == 0 and (requested == T or requested % 8 == 0):
        return requested
    if T <= preferred:
        return T
    for cand in (preferred, 256, 128, 64, 32, 16, 8):
        if cand <= T and T % cand == 0:
            return cand
    return T


def multihead_attention(x, wq, wk, wv, wo, num_head, *,
                        q_block=None, k_block=None, mxu_dtype=jnp.float32):
    """Causal multi-head attention matching MultiHead_Attention.forward
    (qkv_bias=False, dropout=0.0, causal_attention=True).  Weights are stored
    transposed, i.e. (in_features, out_features)."""
    B, T, in_dim = x.shape
    out_dim = wq.shape[1]
    assert out_dim % num_head == 0
    H = num_head
    d = out_dim // num_head

    # Wide Q/K/V projections as plain XLA matmuls (full MXU lane usage), head
    # split afterwards.  This removes the in-kernel (H, T, in_dim) broadcast
    # and the per-query-tile K/V recomputation of the previous version.
    q = (x @ wq).reshape(B, T, H, d).transpose(0, 2, 1, 3)   # (B, H, T, d)
    k = (x @ wk).reshape(B, T, H, d).transpose(0, 2, 1, 3)
    v = (x @ wv).reshape(B, T, H, d).transpose(0, 2, 1, 3)
    wo_h = wo.reshape(H, d, out_dim)                         # (H, d, out_dim)

    # Query tile modest (<=256), key tile larger (<=512): live score tensors
    # are (H, tq, tk), so the kernel fits v7x's 64 MiB VMEM and leaves
    # headroom for double-buffered K/V tiles on v5e/v6e too.
    tq = _pick_tile(T, q_block, 256)
    tk = _pick_tile(T, k_block, 512)
    nq, nk = T // tq, T // tk

    kernel = functools.partial(attn_kernel, head_dim=d, q_block=tq,
                               k_block=tk, mxu_dtype=mxu_dtype)

    # VMEM budget: double-buffered blocks + context scratch + score intermediates.
    itemsize = 4
    block_bytes = itemsize * (
        2 * H * tq * d            # q block (double-buffered)
        + 2 * 2 * H * tk * d      # k, v blocks
        + 2 * H * d * out_dim     # out_proj weights
        + 2 * tq * out_dim        # output block
        + H * tq * d              # ctx scratch
        + 4 * H * tq * tk)        # s / e / w / misc intermediates
    vmem_limit = int(min(56 * 2**20, max(2 * block_bytes, 32 * 2**20)))

    flops = B * (4 * H * T * T * d                 # scores + context
                 + 2 * T * out_dim * out_dim)      # fused output projection
    cost = pl.CostEstimate(
        flops=int(flops),
        transcendentals=int(B * H * T * T),
        bytes_accessed=int(itemsize * (B * H * T * d              # Q
                                       + 2 * B * nq * H * T * d   # K, V re-streamed per q tile
                                       + H * d * out_dim          # out_proj weights
                                       + B * T * out_dim)))       # output

    return pl.pallas_call(
        kernel,
        out_shape=jax.ShapeDtypeStruct((B, T, out_dim), x.dtype),
        grid=(B, nq, nk),
        in_specs=[
            pl.BlockSpec((pl.Squeezed(), H, tq, d), lambda b, qi, ki: (b, 0, qi, 0)),  # Q
            pl.BlockSpec((pl.Squeezed(), H, tk, d), lambda b, qi, ki: (b, 0, ki, 0)),  # K
            pl.BlockSpec((pl.Squeezed(), H, tk, d), lambda b, qi, ki: (b, 0, ki, 0)),  # V
            pl.BlockSpec((H, d, out_dim), lambda b, qi, ki: (0, 0, 0)),                # out_proj
        ],
        out_specs=pl.BlockSpec((pl.Squeezed(), tq, out_dim), lambda b, qi, ki: (b, qi, 0)),
        scratch_shapes=[pltpu.VMEM((H, tq, d), jnp.float32)],
        compiler_params=pltpu.CompilerParams(
            dimension_semantics=("parallel", "parallel", "arbitrary"),
            vmem_limit_bytes=vmem_limit),
        cost_estimate=cost,
    )(q, k, v, wo_h)


def mha_reference(x, wq, wk, wv, wo, mask, num_head):
    """Pure-JAX reference mirroring the PyTorch forward exactly."""
    B, T, in_dim = x.shape
    out_dim = wq.shape[1]
    d = out_dim // num_head
    q = (x @ wq).reshape(B, T, num_head, d).transpose(0, 2, 1, 3)
    k = (x @ wk).reshape(B, T, num_head, d).transpose(0, 2, 1, 3)
    v = (x @ wv).reshape(B, T, num_head, d).transpose(0, 2, 1, 3)
    s = (q @ jnp.swapaxes(k, 2, 3)) / jnp.float32(math.sqrt(float(d)))
    s = jnp.where(mask[None, None] > 0.5, -jnp.inf, s)
    # softmax over head axis (dim=1), same stable formulation as torch.softmax
    m = jnp.max(s, axis=1, keepdims=True)
    e = jnp.exp(s - m)
    w = e / jnp.sum(e, axis=1, keepdims=True)
    ctx = jnp.swapaxes(w @ v, 1, 2).reshape(B, T, out_dim)
    return ctx @ wo


if __name__ == "__main__":
    # Small shapes consistent with the module.
    B, T, in_dim, out_dim, num_head = 2, 8, 32, 32, 4
    context_length = T

    key = jax.random.PRNGKey(0)
    kx, kq, kk, kv, ko = jax.random.split(key, 5)

    x = jax.random.normal(kx, (B, T, in_dim), dtype=jnp.float32)

    # nn.Linear default init: U(-1/sqrt(fan_in), 1/sqrt(fan_in)); qkv_bias=False
    # so no biases anywhere.  Stored transposed: (in_features, out_features).
    def linear_w(k, fan_in, fan_out):
        bound = 1.0 / math.sqrt(fan_in)
        return jax.random.uniform(k, (fan_in, fan_out), jnp.float32, -bound, bound)

    wq = linear_w(kq, in_dim, out_dim)
    wk = linear_w(kk, in_dim, out_dim)
    wv = linear_w(kv, in_dim, out_dim)
    wo = linear_w(ko, out_dim, out_dim)

    # causal mask buffer (used only by the reference; the kernel builds it in-kernel)
    causal_mask = jnp.triu(jnp.ones((context_length, context_length), jnp.float32), k=1)

    fwd = jax.jit(functools.partial(multihead_attention, num_head=num_head))
    out = jax.block_until_ready(fwd(x, wq, wk, wv, wo))

    ref = jax.block_until_ready(mha_reference(x, wq, wk, wv, wo, causal_mask, num_head))

    assert out.shape == (B, T, out_dim)
    # NaNs are expected (softmax over head axis + causal -inf mask) and must
    # match the reference exactly.  Tolerance covers the approximate EUP
    # reciprocal used for the softmax denominator; everything else is f32.
    assert np.allclose(np.asarray(out), np.asarray(ref), atol=5e-3, rtol=5e-3,
                       equal_nan=True), "Pallas kernel deviates from reference"

    print("KERNEL_OK")
</pallas_src>

<mosaic_0001>
module attributes {stable_mosaic.version = 11 : i64} {
  func.func @attn_kernel(%arg0: i32, %arg1: i32, %arg2: i32, %arg3: memref<1x4x8x8xf32, #tpu.memory_space<vmem>>, %arg4: memref<1x4x8x8xf32, #tpu.memory_space<vmem>>, %arg5: memref<1x4x8x8xf32, #tpu.memory_space<vmem>>, %arg6: memref<4x8x32xf32, #tpu.memory_space<vmem>>, %arg7: memref<1x8x32xf32, #tpu.memory_space<vmem>>, %arg8: memref<4x8x8xf32, #tpu.memory_space<vmem>>) attributes {dimension_semantics = [#tpu.dimension_semantics<parallel>, #tpu.dimension_semantics<parallel>, #tpu.dimension_semantics<arbitrary>], iteration_bounds = array<i64: 2, 1, 1>, scalar_prefetch = 0 : i64, scratch_operands = 1 : i64, tpu.core_type = #tpu.core_type<tc>, window_params = [{transform_indices = @transform_0, window_bounds = array<i64: 1, 4, 8, 8>}, {transform_indices = @transform_1, window_bounds = array<i64: 1, 4, 8, 8>}, {transform_indices = @transform_2, window_bounds = array<i64: 1, 4, 8, 8>}, {pipeline_mode = #tpu.pipeline_mode<synchronous>, transform_indices = @transform_3, window_bounds = array<i64: 4, 8, 32>}, {transform_indices = @transform_4, window_bounds = array<i64: 1, 8, 32>}]} {
    %c0_i32 = arith.constant 0 : i32
    %0 = arith.cmpi eq, %arg2, %c0_i32 : i32
    %1 = arith.extui %0 : i1 to i32
    %c0_i32_0 = arith.constant 0 : i32
    %2 = arith.cmpi ne, %1, %c0_i32_0 : i32
    scf.if %2 {
      %cst_26 = arith.constant 0.000000e+00 : f32
      %43 = vector.broadcast %cst_26 : f32 to vector<4x8x8xf32>
      %c0_27 = arith.constant 0 : index
      %c0_28 = arith.constant 0 : index
      %c0_29 = arith.constant 0 : index
      %44 = vector.load %arg8[%c0_27, %c0_28, %c0_29] : memref<4x8x8xf32, #tpu.memory_space<vmem>>, vector<4x8x8xf32>
      tpu.vector_store %arg8[%c0_27, %c0_28, %c0_29], %43 {strides = array<i32>} : memref<4x8x8xf32, #tpu.memory_space<vmem>>, vector<4x8x8xf32>,
    } else {
    }
    %c0 = arith.constant 0 : index
    %c0_1 = arith.constant 0 : index
    %c0_2 = arith.constant 0 : index
    %c0_3 = arith.constant 0 : index
    %3 = vector.load %arg3[%c0, %c0_1, %c0_2, %c0_3] : memref<1x4x8x8xf32, #tpu.memory_space<vmem>>, vector<1x4x8x8xf32>
    %4 = vector.shape_cast %3 : vector<1x4x8x8xf32> to vector<4x8x8xf32>
    %cst = arith.constant 0.353553385 : f32
    %5 = vector.broadcast %cst : f32 to vector<4x8x8xf32>
    %6 = arith.mulf %4, %5 : vector<4x8x8xf32>
    %c0_4 = arith.constant 0 : index
    %c0_5 = arith.constant 0 : index
    %c0_6 = arith.constant 0 : index
    %c0_7 = arith.constant 0 : index
    %7 = vector.load %arg4[%c0_4, %c0_5, %c0_6, %c0_7] : memref<1x4x8x8xf32, #tpu.memory_space<vmem>>, vector<1x4x8x8xf32>
    %8 = vector.shape_cast %7 : vector<1x4x8x8xf32> to vector<4x8x8xf32>
    "tpu.trace_start"() <{level = 10 : i32, message = "hqd,hkd->hqk"}> : () -> ()
    %cst_8 = arith.constant dense<0.000000e+00> : vector<4x8x8xf32>
    %9 = tpu.matmul %6, %8, %cst_8 {dimension_numbers = #tpu.dot_dimension_numbers<[2], [2], [1], [1], [0, 0, 0, 1, 1, 1], [0], [0]>} : vector<4x8x8xf32>, vector<4x8x8xf32>, vector<4x8x8xf32> -> vector<4x8x8xf32>
    "tpu.trace_stop"() : () -> ()
    %c8_i32 = arith.constant 8 : i32
    %10 = arith.muli %arg1, %c8_i32 : i32
    %c8_i32_9 = arith.constant 8 : i32
    %11 = arith.muli %arg2, %c8_i32_9 : i32
    %12 = tpu.iota {dimensions = array<i32: 0>} : vector<8x8xi32>
    %13 = vector.broadcast %10 : i32 to vector<8x8xi32>
    %14 = arith.addi %12, %13 : vector<8x8xi32>
    %15 = tpu.iota {dimensions = array<i32: 1>} : vector<8x8xi32>
    %16 = vector.broadcast %11 : i32 to vector<8x8xi32>
    %17 = arith.addi %15, %16 : vector<8x8xi32>
    %18 = arith.cmpi sgt, %17, %14 : vector<8x8xi32>
    %19 = vector.shape_cast %18 : vector<8x8xi1> to vector<1x8x8xi1>
    %cst_10 = arith.constant 0xFF800000 : f32
    %20 = vector.shape_cast %19 : vector<1x8x8xi1> to vector<1x8x8xi1>
    %21 = vector.broadcast %20 : vector<1x8x8xi1> to vector<4x8x8xi1>
    %22 = vector.broadcast %cst_10 : f32 to vector<4x8x8xf32>
    %23 = arith.select %21, %22, %9 : vector<4x8x8xi1>, vector<4x8x8xf32>
    %cst_11 = arith.constant dense<0xFF800000> : vector<8x8xf32>
    %24 = vector.multi_reduction <maximumf>, %23, %cst_11 [0] : vector<4x8x8xf32> to vector<8x8xf32>
    %25 = vector.shape_cast %24 : vector<8x8xf32> to vector<1x8x8xf32>
    %26 = vector.broadcast %25 : vector<1x8x8xf32> to vector<4x8x8xf32>
    %27 = arith.subf %23, %26 : vector<4x8x8xf32>
    %28 = math.exp %27 : vector<4x8x8xf32>
    %cst_12 = arith.constant dense<0.000000e+00> : vector<8x8xf32>
    %29 = vector.multi_reduction <add>, %28, %cst_12 [0] : vector<4x8x8xf32> to vector<8x8xf32>
    %30 = vector.shape_cast %29 : vector<8x8xf32> to vector<1x8x8xf32>
    %31 = tpu.reciprocal %30 {approx = true} : vector<1x8x8xf32> -> vector<1x8x8xf32>
    %32 = vector.broadcast %31 : vector<1x8x8xf32> to vector<4x8x8xf32>
    %33 = arith.mulf %28, %32 : vector<4x8x8xf32>
    %c0_13 = arith.constant 0 : index
    %c0_14 = arith.constant 0 : index
    %c0_15 = arith.constant 0 : index
    %34 = vector.load %arg8[%c0_13, %c0_14, %c0_15] : memref<4x8x8xf32, #tpu.memory_space<vmem>>, vector<4x8x8xf32>
    %c0_16 = arith.constant 0 : index
    %c0_17 = arith.constant 0 : index
    %c0_18 = arith.constant 0 : index
    %c0_19 = arith.constant 0 : index
    %35 = vector.load %arg5[%c0_16, %c0_17, %c0_18, %c0_19] : memref<1x4x8x8xf32, #tpu.memory_space<vmem>>, vector<1x4x8x8xf32>
    %36 = vector.shape_cast %35 : vector<1x4x8x8xf32> to vector<4x8x8xf32>
    "tpu.trace_start"() <{level = 10 : i32, message = "hqk,hkd->hqd"}> : () -> ()
    %cst_20 = arith.constant dense<0.000000e+00> : vector<4x8x8xf32>
    %37 = tpu.matmul %33, %36, %cst_20 {dimension_numbers = #tpu.dot_dimension_numbers<[2], [1], [1], [2], [0, 0, 0, 1, 1, 2], [0], [0]>} : vector<4x8x8xf32>, vector<4x8x8xf32>, vector<4x8x8xf32> -> vector<4x8x8xf32>
    "tpu.trace_stop"() : () -> ()
    %38 = arith.addf %34, %37 : vector<4x8x8xf32>
    %c0_21 = arith.constant 0 : index
    %c0_22 = arith.constant 0 : index
    %c0_23 = arith.constant 0 : index
    %39 = vector.load %arg8[%c0_21, %c0_22, %c0_23] : memref<4x8x8xf32, #tpu.memory_space<vmem>>, vector<4x8x8xf32>
    tpu.vector_store %arg8[%c0_21, %c0_22, %c0_23], %38 {strides = array<i32>} : memref<4x8x8xf32, #tpu.memory_space<vmem>>, vector<4x8x8xf32>,
    %c0_i32_24 = arith.constant 0 : i32
    %40 = arith.cmpi eq, %arg2, %c0_i32_24 : i32
    %41 = arith.extui %40 : i1 to i32
    %c0_i32_25 = arith.constant 0 : i32
    %42 = arith.cmpi ne, %41, %c0_i32_25 : i32
    scf.if %42 {
      %c0_26 = arith.constant 0 : index
      %c0_27 = arith.constant 0 : index
      %c0_28 = arith.constant 0 : index
      %43 = vector.load %arg8[%c0_26, %c0_27, %c0_28] : memref<4x8x8xf32, #tpu.memory_space<vmem>>, vector<4x8x8xf32>
      %c0_29 = arith.constant 0 : index
      %c0_30 = arith.constant 0 : index
      %c0_31 = arith.constant 0 : index
      %44 = vector.load %arg6[%c0_29, %c0_30, %c0_31] : memref<4x8x32xf32, #tpu.memory_space<vmem>>, vector<4x8x32xf32>
      "tpu.trace_start"() <{level = 10 : i32, message = "hqd,hdo->hqo"}> : () -> ()
      %cst_32 = arith.constant dense<0.000000e+00> : vector<4x8x32xf32>
      %45 = tpu.matmul %43, %44, %cst_32 {dimension_numbers = #tpu.dot_dimension_numbers<[2], [1], [1], [2], [0, 0, 0, 1, 1, 2], [0], [0]>} : vector<4x8x8xf32>, vector<4x8x32xf32>, vector<4x8x32xf32> -> vector<4x8x32xf32>
      "tpu.trace_stop"() : () -> ()
      %cst_33 = arith.constant dense<0.000000e+00> : vector<8x32xf32>
      %46 = vector.multi_reduction <add>, %45, %cst_33 [0] : vector<4x8x32xf32> to vector<8x32xf32>
      %c0_34 = arith.constant 0 : index
      %c0_35 = arith.constant 0 : index
      %c0_36 = arith.constant 0 : index
      %47 = vector.load %arg7[%c0_34, %c0_35, %c0_36] : memref<1x8x32xf32, #tpu.memory_space<vmem>>, vector<1x8x32xf32>
      %48 = vector.shape_cast %47 : vector<1x8x32xf32> to vector<8x32xf32>
      %49 = vector.shape_cast %46 : vector<8x32xf32> to vector<1x8x32xf32>
      tpu.vector_store %arg7[%c0_34, %c0_35, %c0_36], %49 {strides = array<i32>} : memref<1x8x32xf32, #tpu.memory_space<vmem>>, vector<1x8x32xf32>,
    } else {
    }
    return
  }
  func.func @transform_0(%arg0: i32, %arg1: i32, %arg2: i32) -> (i32, i32, i32, i32) {
    %c0_i32 = arith.constant 0 : i32
    %c0_i32_0 = arith.constant 0 : i32
    %c0_i32_1 = arith.constant 0 : i32
    return %arg0, %c0_i32, %arg1, %c0_i32_0 : i32, i32, i32, i32
  }
  func.func @transform_1(%arg0: i32, %arg1: i32, %arg2: i32) -> (i32, i32, i32, i32) {
    %c0_i32 = arith.constant 0 : i32
    %c0_i32_0 = arith.constant 0 : i32
    %c0_i32_1 = arith.constant 0 : i32
    return %arg0, %c0_i32, %arg2, %c0_i32_0 : i32, i32, i32, i32
  }
  func.func @transform_2(%arg0: i32, %arg1: i32, %arg2: i32) -> (i32, i32, i32, i32) {
    %c0_i32 = arith.constant 0 : i32
    %c0_i32_0 = arith.constant 0 : i32
    %c0_i32_1 = arith.constant 0 : i32
    return %arg0, %c0_i32, %arg2, %c0_i32_0 : i32, i32, i32, i32
  }
  func.func @transform_3(%arg0: i32, %arg1: i32, %arg2: i32) -> (i32, i32, i32) {
    %c0_i32 = arith.constant 0 : i32
    %c0_i32_0 = arith.constant 0 : i32
    %c0_i32_1 = arith.constant 0 : i32
    %c0_i32_2 = arith.constant 0 : i32
    return %c0_i32, %c0_i32_0, %c0_i32_1 : i32, i32, i32
  }
  func.func @transform_4(%arg0: i32, %arg1: i32, %arg2: i32) -> (i32, i32, i32) {
    %c0_i32 = arith.constant 0 : i32
    %c0_i32_0 = arith.constant 0 : i32
    return %arg0, %arg1, %c0_i32 : i32, i32, i32
  }
}

</mosaic_0001>

<bundles_post_ra>
// kernel: multihead_attention.1
= control target key start
LH: loop header
LB: loop body
LE: loop exit
PB: predicated region body
PF: predicated region fallthrough
CT: control target
= control target key end

     0   :  { %9 = vsyncpa [#allocation4], 0  ;;  %s1924_s0 = inlined_call_operand.vmem [shape: f32[2,4,8,8], index: 0, kind: input, shape index: {}]   ;;  %s1925_s1 = inlined_call_operand.vmem [shape: f32[2,4,8,8], index: 1, kind: input, shape index: {}]   ;;  %s1926_s2 = inlined_call_operand.vmem [shape: f32[2,4,8,8], index: 2, kind: input, shape index: {}]   ;;  %s1927_s3 = inlined_call_operand.vmem [shape: f32[4,8,32], index: 3, kind: input, shape index: {}]   ;;  %s1928_s4 = inlined_call_operand.hbm [shape: f32[2,8,32], index: 4, kind: output, shape index: {}]  }
   0x1   :  { %11 = vsyncpa [#allocation4 + $0x1], 0  ;;  %s1706_s15 = smov 0   ;;  %s1708_s16 = smov 0  }
   0x2   :  { %s1710_s17 = smov 0   ;;  %s1712_s18 = smov 0  }
   0x3   :  { %s1714_s19 = smov 0   ;;  %s1716_s20 = smov 0  }
   0x4 LB: > { %s1412_s21 = sadd.s32 4294967295, %s1676_s20   ;;  %s1413_s22 = sadd.s32 4294967294, %s1676_s20   ;;  %s1676_s20 = sphi %s1716_s20, %s17_s20   ;;  %s1672_s19 = sphi %s1714_s19, %s1935_s19   ;;  %s1668_s18 = sphi %s1712_s18, %s1934_s18   ;;  %s1664_s17 = sphi %s1710_s17, %s1933_s17   ;;  %s1660_s16 = sphi %s1708_s16, %s1932_s16   ;;  %s1656_s15 = sphi %s1706_s15, %s1931_s15  }
   0x5   : > { %s36_s23 = sadd.s32 1, %s1672_s19  ;;  %s150_s24 = sadd.s32 1, %s1664_s17 }
   0x6   : > { %p38_p0 = scmp.ge.s32.totalorder %s36_s23, 2  ;;  %p160_p1 = scmp.ne.s32.totalorder %s1664_s17, %s1660_s16 }
   0x7   : > { %p161_p2 = scmp.eq.s32.totalorder %s1412_s21, 1  ;;  %p166_p3 = scmp.ne.s32.totalorder %s1660_s16, %s1656_s15 }
   0x8   : > { %s1937_s23 = smov (%p38_p0, %s36_s23), 0  ;;  %p167_p5 = scmp.eq.s32.totalorder %s1413_s22, 1 }
   0x9   : > { %p1746_p4 = por %p161_p2, %p160_p1  ;;  %s145_s26 = ssub.s32 %s1672_s19, %s1937_s23 }
   0xa   : > { %p1416_p6 = scmp.ge.s32.totalorder %s1676_s20, 1  ;;  %p148_p7 = scmp.eq.s32.totalorder %s145_s26, 0 }
   0xb   : > { %p1753_p8 = por %p167_p5, %p166_p3  ;;  %p221_p9 = scmp.lt.s32.totalorder %s1676_s20, 3 }
   0xc   : > { %s1759_s28 = scalar_select %p148_p7, %s1664_s17, %s150_s24  }
   0xd   : > { %p222_p10 = pnand %p1416_p6, %p221_p9 }
   0xe   : > { %p266_p11 = scmp.lt.s32.totalorder (!%p222_p10), %s1668_s18, 1  ;;  %vm294_vm0 = vcmask (!%p222_p10), 64512   ;;  %v1678_v0 = vmov (!%p222_p10), 0.0   ;;  %vm1679_vm1 = vmmov (!%p222_p10), 0   ;;  %v618_v15 = vlaneseq (!%p222_p10)  ;;  %v979_v63 = vld [vmem:[%s1927_s3] sm:$0xff] (!%p222_p10)  ;;  %s263_s6 = sand.u32 (!%p222_p10), 1, %s1660_s16  }
   0xf   : > { %225 = sbr.rel (%p222_p10) target bundleno = 745 (0x2e9), region = 36  ;;  %1471 = vmatprep.subr.mxu0 (!%p222_p10), %v1678_v0  ;;  %1476 = vmatprep.subr.mxu1 (!%p222_p10), %v1678_v0  ;;  %295 = vst.msk [vmem:[#allocation2] sm:$0xff] (!%p222_p10), %vm294_vm0, %v1678_v0  ;;  %296 = vst.msk [vmem:[#allocation2 + $0x8] sm:$0xff] (!%p222_p10), %vm294_vm0, %v1678_v0  ;;  %vm1275_vm3 = vcmask (!%p222_p10), 261120   ;;  %s1441_s8 = sshll.u32 (!%p222_p10), %s1668_s18, 7 }
  0x10   : > { %297 = vst.msk [vmem:[#allocation2 + $0x10] sm:$0xff] (!%p222_p10), %vm294_vm0, %v1678_v0  ;;  %298 = vst.msk [vmem:[#allocation2 + $0x18] sm:$0xff] (!%p222_p10), %vm294_vm0, %v1678_v0  ;;  %1473 = vmatprep.mubr.msk.f32.mxu0 (!%p222_p10), %vm1679_vm1, %v1678_v0  ;;  %1478 = vmatprep.mubr.msk.f32.mxu1 (!%p222_p10), %vm1679_vm1, %v1678_v0  ;;  %v619_v16 = vshrl.u32 (!%p222_p10), %v618_v15, 7  ;;  %v623_v17 = vand.u32 (!%p222_p10), 127, %v618_v15  ;;  %s1285_s14 = scalar_lea.sflag (!%p222_p10), [#allocation4], %s263_s6  ;;  %s1680_s21 = smov (!%p222_p10), [#allocation3]  }
  0x11   : > { %s1602_s22 = sshll.u32 (!%p222_p10), %s1680_s21, 4  ;;  %s1603_s22 = int_to_ptr.vmem [resolvable:$false] %s1602_s22 }
  0x12   : > { %vm626_vm2 = vcmp.gt.s32.totalorder (!%p222_p10), %v623_v17, %v619_v16  ;;  %s1604_s24 = scalar_lea.vmem (!%p222_p10), %s1603_s22, 256 }
  0x16   : > { %s267_s29 = scalar_select %p266_p11, %s1668_s18, 1 }
  0x18   : > { %s1777_s30 = sshll.u32 %s267_s29, 5 }
  0x19   : > { %s273_s7 = scalar_lea.vmem %s1924_s0, %s1777_s30  ;;  %s281_s10 = scalar_lea.vmem %s1925_s1, %s1777_s30 }
  0x1a   : > { %v307_v1 = vld [vmem:[%s281_s10] sm:$0xff]  ;;  %v308_v2 = vld [vmem:[%s281_s10 + $0x8] sm:$0xff]  ;;  %v309_v6 = vld [vmem:[%s281_s10 + $0x10] sm:$0xff]  ;;  %s1811_s13 = scalar_lea.vmem %s1926_s2, %s1777_s30 }
  0x1b   : > { %v299_v3 = vld [vmem:[%s273_s7] sm:$0xff]  ;;  %1472 = vmatpush3.xpose.msk.msra.mxu0 %vm294_vm0, %v307_v1  ;;  %1477 = vmatpush3.xpose.msk.msra.mxu1 %vm294_vm0, %v308_v2  ;;  %v300_v5 = vld [vmem:[%s273_s7 + $0x8] sm:$0xff]  ;;  %v310_v8 = vld [vmem:[%s281_s10 + $0x18] sm:$0xff] }
  0x1c   : > { %v303_v4 = vmul.f32 0.35355338, %v299_v3  ;;  %v304_v7 = vmul.f32 0.35355338, %v300_v5  ;;  %1481 = vmatprep.subr.mxu0 %v1678_v0  ;;  %1486 = vmatprep.subr.mxu1 %v1678_v0  ;;  %v301_v9 = vld [vmem:[%s273_s7 + $0x10] sm:$0xff]  ;;  %v302_v10 = vld [vmem:[%s273_s7 + $0x18] sm:$0xff] }
  0x1d   : > { %v305_v11 = vmul.f32 0.35355338, %v301_v9  ;;  %v306_v12 = vmul.f32 0.35355338, %v302_v10  ;;  %v668_v13 = vld [vmem:[%s1811_s13] sm:$0xff]  ;;  %v669_v14 = vld [vmem:[%s1811_s13 + $0x8] sm:$0xff] }
  0x1e   : > { %1474 = vmatmul.mubr.msk.f32.vlgmr.msra.gmra.mrb[0].mxu0 %vm294_vm0, %v303_v4  ;;  %1479 = vmatmul.mubr.msk.f32.vlgmr.msra.gmra.mrb[0].mxu1 %vm294_vm0, %v304_v7  ;;  %v670_v59 = vld [vmem:[%s1811_s13 + $0x10] sm:$0xff]  ;;  %v671_v62 = vld [vmem:[%s1811_s13 + $0x18] sm:$0xff]  ;;  %v980_v1 = vld [vmem:[%s1927_s3 + $0x8] sm:$0xff]  ;;  %s1417_s7 = sshll.u32 %s263_s6, 3  ;;  %s1876_s13 = scalar_lea.hbm %s1928_s4, %s1441_s8 }
  0x1f   : > { %1482 = vmatpush3.xpose.msk.msra.mxu0 %vm294_vm0, %v309_v6  ;;  %1487 = vmatpush3.xpose.msk.msra.mxu1 %vm294_vm0, %v310_v8  ;;  %v664_v2 = vld [vmem:[#allocation2] sm:$0xff]  ;;  %v665_v3 = vld [vmem:[#allocation2 + $0x8] sm:$0xff]  ;;  %v666_v10 = vld [vmem:[#allocation2 + $0x10] sm:$0xff]  ;;  %s265_s9 = scalar_lea.vmem [#allocation3], %s1417_s7 }
  0x20   : > { %1483 = vmatprep.mubr.msk.f32.mxu0 %vm1679_vm1, %v1678_v0  ;;  %1488 = vmatprep.mubr.msk.f32.mxu1 %vm1679_vm1, %v1678_v0  ;;  %s1299_s10 = sshll.u32 %s265_s9, 4  ;;  %s1878_s10 = int_to_ptr.vmem [resolvable:$true] %s1299_s10 }
  0x21   : > { %1491 = vmatprep.subr.mxu0 %v1678_v0  ;;  %1496 = vmatprep.subr.mxu1 %v1678_v0  ;;  %s1598_s18 = scalar_lea.vmem %s1878_s10, 128  ;;  %p1605_p1 = scmp.lt.s32.totalorder %s1878_s10, %s1603_s22 }
  0x22   : > { %1484 = vmatmul.mubr.msk.f32.vlgmr.msra.gmra.mrb[2].mxu0 %vm294_vm0, %v305_v11  ;;  %1489 = vmatmul.mubr.msk.f32.vlgmr.msra.gmra.mrb[2].mxu1 %vm294_vm0, %v306_v12  ;;  %v667_v11 = vld [vmem:[#allocation2 + $0x18] sm:$0xff]  ;;  %p1599_p12 = scmp.ne.s32.totalorder %s1878_s10, %s1598_s18  ;;  %p1606_p2 = scmp.lt.s32.totalorder %s1604_s24, %s1598_s18 }
  0x23   : > { %1493 = vmatprep.mubr.msk.f32.mxu0 %vm1679_vm1, %v1678_v0  ;;  %1498 = vmatprep.mubr.msk.f32.mxu1 %vm1679_vm1, %v1678_v0 }
  0x24   : > { %1492 = vmatpush3.msra.mxu0 %v668_v13  ;;  %1497 = vmatpush3.msra.mxu1 %v669_v14  ;;  %p1600_p13 = pnand %p1599_p12, %p1746_p4  ;;  %p1607_p3 = por %p1606_p2, %p1605_p1 }
  0x25   : > { %1501 = vmatprep.subr.mxu0 %v1678_v0  ;;  %1506 = vmatprep.subr.mxu1 %v1678_v0 }
  0x26   : > { %p1601_p0 = pneg %p1600_p13 }
  0x28   : > { %p1608_p5 = pnand %p1607_p3, %p1601_p0 }
  0xf1   : > { %v384_v18 = vpop.f32.mrb[0].mxu0  ;;  %v460_v19 = vpop.f32.mrb[0].mxu1 }
  0xf2   : > { %v629_v20 = vsel %vm626_vm2, -inf, %v384_v18  ;;  %v630_v21 = vsel %vm626_vm2, -inf, %v460_v19  ;;  %v1475_v22 = vpop.f32.mrb[1].mxu0  ;;  %v1480_v23 = vpop.f32.mrb[1].mxu1  ;;  %v981_v18 = vld [vmem:[%s1927_s3 + $0x10] sm:$0xff] }
  0xf3   : > { %v633_v24 = vsel %vm294_vm0, %v629_v20, -inf  ;;  %v634_v25 = vsel %vm294_vm0, %v630_v21, -inf }
  0xf4   : > { %v637_v26 = vmax.f32 %v633_v24, %v634_v25 }
  0xf5   : > { %v536_v27 = vpop.f32.mrb[2].mxu0  ;;  %v612_v28 = vpop.f32.mrb[2].mxu1 }
  0xf6   : > { %v631_v29 = vsel %vm626_vm2, -inf, %v536_v27  ;;  %v632_v30 = vsel %vm626_vm2, -inf, %v612_v28  ;;  %v1485_v31 = vpop.f32.mrb[3].mxu0  ;;  %v1490_v32 = vpop.f32.mrb[3].mxu1 }
  0xf7   : > { %v635_v33 = vsel %vm294_vm0, %v631_v29, -inf  ;;  %v636_v34 = vsel %vm294_vm0, %v632_v30, -inf }
  0xf8   : > { %v638_v35 = vmax.f32 %v635_v33, %v636_v34 }
  0xfa   : > { %v639_v36 = vmax.f32 %v637_v26, %v638_v35 }
  0xfc   : > { %v640_v37 = vsub.f32 %v629_v20, %v639_v36  ;;  %v641_v38 = vsub.f32 %v630_v21, %v639_v36  ;;  %v642_v39 = vsub.f32 %v631_v29, %v639_v36  ;;  %v643_v40 = vsub.f32 %v632_v30, %v639_v36  ;;  %v982_v21 = vld [vmem:[%s1927_s3 + $0x18] sm:$0xff] }
  0xfe   : > { %v644_v41 = vmul.f32 1.442695, %v640_v37  ;;  %v646_v42 = vmul.f32 1.442695, %v641_v38  ;;  %v648_v43 = vmul.f32 1.442695, %v642_v39 }
  0xff   : > { %v650_v44 = vmul.f32 1.442695, %v643_v40 }
 0x100   : > { %1588 = vpow2.f32 %v644_v41 }
 0x101   : > { %1590 = vpow2.f32 %v646_v42 }
 0x102   : > { %1592 = vpow2.f32 %v648_v43 }
 0x103   : > { %1594 = vpow2.f32 %v650_v44 }
 0x10a   : > { %v1589_v45 = vpop.eup %1588 }
 0x10b   : > { %v1591_v46 = vpop.eup %1590  ;;  %v652_v47 = vsel %vm294_vm0, %v1589_v45, 0.0 }
 0x10c   : > { %v1593_v48 = vpop.eup %1592  ;;  %v653_v49 = vsel %vm294_vm0, %v1591_v46, 0.0 }
 0x10d   : > { %v1595_v50 = vpop.eup %1594  ;;  %v654_v51 = vadd.f32 %v653_v49, %v652_v47  ;;  %v655_v52 = vsel %vm294_vm0, %v1593_v48, 0.0 }
 0x10e   : > { %v657_v54 = vsel %vm294_vm0, %v1595_v50, 0.0 }
 0x10f   : > { %v656_v53 = vadd.f32 %v655_v52, %v654_v51 }
 0x111   : > { %v658_v55 = vadd.f32 %v657_v54, %v656_v53 }
 0x113   : > { %1596 = vrcp.f32 %v658_v55 }
 0x11d   : > { %v1597_v56 = vpop.eup %1596 }
 0x11e   : > { %v660_v57 = vmul.f32 %v1597_v56, %v1589_v45  ;;  %v661_v58 = vmul.f32 %v1597_v56, %v1591_v46  ;;  %v662_v60 = vmul.f32 %v1597_v56, %v1593_v48  ;;  %v663_v61 = vmul.f32 %v1597_v56, %v1595_v50 }
 0x120   : > { %1494 = vmatmul.mubr.msk.f32.vlgmr.msra.gmra.mrb[4].mxu0 %vm294_vm0, %v660_v57  ;;  %1499 = vmatmul.mubr.msk.f32.vlgmr.msra.gmra.mrb[4].mxu1 %vm294_vm0, %v661_v58 }
 0x121   : > { %1502 = vmatpush3.msra.mxu0 %v670_v59  ;;  %1503 = vmatprep.mubr.msk.f32.mxu0 %vm1679_vm1, %v1678_v0 }
 0x122   : > { %1507 = vmatpush3.msra.mxu1 %v671_v62  ;;  %1508 = vmatprep.mubr.msk.f32.mxu1 %vm1679_vm1, %v1678_v0 }
 0x123   : > { %1511 = vmatprep.subr.mxu0 %v1678_v0  ;;  %1516 = vmatprep.subr.mxu1 %v1678_v0 }
 0x124   : > { %1504 = vmatmul.mubr.msk.f32.vlgmr.msra.gmra.mrb[6].mxu0 %vm294_vm0, %v662_v60  ;;  %1509 = vmatmul.mubr.msk.f32.vlgmr.msra.gmra.mrb[6].mxu1 %vm294_vm0, %v663_v61 }
 0x125   : > { %1513 = vmatprep.mubr.msk.f32.mxu0 %vm1679_vm1, %v1678_v0  ;;  %1518 = vmatprep.mubr.msk.f32.mxu1 %vm1679_vm1, %v1678_v0 }
 0x126   : > { %1512 = vmatpush3.msra.mxu0 %v979_v63  ;;  %1517 = vmatpush3.msra.mxu1 %v980_v1 }
 0x127   : > { %1521 = vmatprep.subr.mxu0 %v1678_v0  ;;  %1526 = vmatprep.subr.mxu1 %v1678_v0 }
 0x1f3   : > { %v741_v4 = vpop.f32.mrb[4].mxu0  ;;  %v814_v5 = vpop.f32.mrb[4].mxu1 }
 0x1f4   : > { %v964_v6 = vadd.f32 %v741_v4, %v664_v2  ;;  %v965_v7 = vadd.f32 %v814_v5, %v665_v3  ;;  %v1495_v8 = vpop.f32.mrb[5].mxu0  ;;  %v1500_v9 = vpop.f32.mrb[5].mxu1 }
 0x1f6   : > { %968 = vst.msk [vmem:[#allocation2] sm:$0xff] %vm294_vm0, %v964_v6  ;;  %969 = vst.msk [vmem:[#allocation2 + $0x8] sm:$0xff] %vm294_vm0, %v965_v7 }
 0x1f7   : > { %v887_v12 = vpop.f32.mrb[6].mxu0  ;;  %v960_v13 = vpop.f32.mrb[6].mxu1 }
 0x1f8   : > { %v966_v14 = vadd.f32 %v887_v12, %v666_v10  ;;  %v967_v15 = vadd.f32 %v960_v13, %v667_v11  ;;  %v1505_v16 = vpop.f32.mrb[7].mxu0  ;;  %v1510_v17 = vpop.f32.mrb[7].mxu1 }
 0x1fa   : > { %970 = vst.msk [vmem:[#allocation2 + $0x10] sm:$0xff] %vm294_vm0, %v966_v14  ;;  %971 = vst.msk [vmem:[#allocation2 + $0x18] sm:$0xff] %vm294_vm0, %v967_v15 }
 0x1fd   : > { %v975_v19 = vld [vmem:[#allocation2] sm:$0xff]  ;;  %v976_v20 = vld [vmem:[#allocation2 + $0x8] sm:$0xff] }
 0x1fe   : > { %1514 = vmatmul.mubr.msk.f32.vlgmr.msra.gmra.mrb[8].mxu0 %vm294_vm0, %v975_v19  ;;  %1519 = vmatmul.mubr.msk.f32.vlgmr.msra.gmra.mrb[8].mxu1 %vm294_vm0, %v976_v20 }
 0x1ff   : > { %1522 = vmatpush3.msra.mxu0 %v981_v18  ;;  %1523 = vmatprep.mubr.msk.f32.mxu0 %vm1679_vm1, %v1678_v0 }
 0x200   : > { %1527 = vmatpush3.msra.mxu1 %v982_v21  ;;  %1528 = vmatprep.mubr.msk.f32.mxu1 %vm1679_vm1, %v1678_v0 }
 0x201   : > { %v977_v22 = vld [vmem:[#allocation2 + $0x10] sm:$0xff]  ;;  %v978_v23 = vld [vmem:[#allocation2 + $0x18] sm:$0xff] }
 0x202   : > { %1524 = vmatmul.mubr.msk.f32.vlgmr.msra.gmra.mrb[10].mxu0 %vm294_vm0, %v977_v22  ;;  %1529 = vmatmul.mubr.msk.f32.vlgmr.msra.gmra.mrb[10].mxu1 %vm294_vm0, %v978_v23 }
 0x2d1   : > { %v1052_v24 = vpop.f32.mrb[8].mxu0  ;;  %v1125_v25 = vpop.f32.mrb[8].mxu1 }
 0x2d2   : > { %v1276_v26 = vsel %vm1275_vm3, %v1052_v24, 0.0  ;;  %v1277_v27 = vsel %vm1275_vm3, %v1125_v25, 0.0  ;;  %v1515_v28 = vpop.f32.mrb[9].mxu0  ;;  %v1520_v29 = vpop.f32.mrb[9].mxu1 }
 0x2d3   : > { %v1278_v30 = vadd.f32 %v1277_v27, %v1276_v26 }
 0x2d5   : > { %v1198_v0 = vpop.f32.mrb[10].mxu0  ;;  %v1271_v31 = vpop.f32.mrb[10].mxu1 }
 0x2d6   : > { %v1279_v32 = vsel %vm1275_vm3, %v1198_v0, 0.0  ;;  %v1525_v33 = vpop.f32.mrb[11].mxu0  ;;  %v1530_v34 = vpop.f32.mrb[11].mxu1  ;;  %v1281_v36 = vsel %vm1275_vm3, %v1271_v31, 0.0 }
 0x2d7   : > { %v1280_v35 = vadd.f32 %v1279_v32, %v1278_v30 }
 0x2d9   : > { %v1282_v37 = vadd.f32 %v1281_v36, %v1280_v35 }
 0x2db   : > { %1283 = vst.msk [vmem:[%s265_s9] sm:$0xff] %vm1275_vm3, %v1282_v37 }
 0x2dc   : > { %1611 = shalt.err (!%p1608_p5)
}
 0x2dd   : > { %s1612_s26 = scalar_lea.hbm %s1876_s13, 128  ;;  %s1616_s5 = scalar_lea.hbm %s1928_s4, 256 }
 0x2de   : > { %p1613_p6 = scmp.ne.s32.totalorder %s1876_s13, %s1612_s26  ;;  %p1617_p10 = scmp.lt.u32.totalorder %s1876_s13, %s1928_s4 }
 0x2df   : > { %p1618_p11 = scmp.lt.u32.totalorder %s1616_s5, %s1612_s26  ;;  %p1620_p13 = scmp.lt.u32.totalorder %s1612_s26, %s1876_s13 }
 0x2e0   : > { %p1614_p7 = pnand %p1613_p6, %p1746_p4 }
 0x2e1   : > { %p1619_p12 = por %p1618_p11, %p1617_p10 }
 0x2e2   : > { %p1615_p9 = pneg %p1614_p7 }
 0x2e3   : > { %p1621_p0 = por %p1620_p13, %p1619_p12 }
 0x2e5   : > { %p1622_p1 = pnand %p1621_p0, %p1615_p9 }
 0x2e7   : > { %1625 = shalt.err (!%p1622_p1)
}
 0x2e8   : > { %1531 = dma.vmem_to_hbm [thread:$0]  (%p1746_p4), %s1878_s10, 128, %s1876_s13, %s1285_s14  }
 0x2e9 PF: > { %p1537_p2 = scmp.ge.s32.totalorder %s1676_s20, 2  ;;  %s1311_s8 = sand.u32 1, %s1656_s15  }
 0x2ea   : > { %s1312_s9 = scalar_lea.sflag [#allocation4], %s1311_s8 }
 0x2eb   : > { %p1534_p3 = pnand %p1537_p2, %p1753_p8 }
 0x2ed   : > { %1651 = dma.done.wait (!%p1534_p3), %s1312_s9, 128  }
 0x2ee   : > { %1653 = vsyncadd (!%p1534_p3), %s1312_s9, 4294967168  ;;  %s17_s20 = sadd.s32 1, %s1676_s20   ;;  %s1931_s15 = smov %s1660_s16 }
 0x2ef   : > { %p14_p5 = scmp.ge.s32.totalorder %s17_s20, 4   ;;  %s1932_s16 = smov %s1664_s17 }
 0x2f0   : > { %s1933_s17 = smov %s1759_s28  ;;  %s1934_s18 = smov %s1672_s19 }
 0x2f1   : > { %s1935_s19 = smov %s1937_s23  ;;  %16 = sbr.rel (!%p14_p5) target bundleno = 4 (0x4), region = 85 }
 0x2f8   :  { %1317 = vsyncpa [#allocation4], 1 }
 0x2f9   :  { %1319 = vsyncpa [#allocation4 + $0x1], 1 }

</bundles_post_ra>
